<compile_context>
chip_gen: v7x
topology: tpu7x:2x2x1
jax: 0.10.0
libtpu: 0.0.40
codegen_flags: <defaults>
</compile_context>

<pallas_src>
import math
import numpy as np

import jax
import jax.numpy as jnp
from jax.experimental import pallas as pl
from jax.experimental.pallas import tpu as pltpu


# ---------------------------------------------------------------------------
# Config (mirrors the dict-gating in SalLoss.__init__: last scale uses
# BCE+IoU+SSIM, other scales BCE+IoU; mse/reg/triplet disabled via 0 weights).
# ---------------------------------------------------------------------------
class Config:
    def __init__(self):
        self.lambdas_sal_last = {'bce': 30.0, 'iou': 0.5, 'ssim': 1.0,
                                 'mse': 0.0, 'reg': 0.0, 'triplet': 0.0}
        self.lambdas_sal_others = {'bce': 30.0, 'iou': 0.5, 'ssim': 0.0,
                                   'mse': 0.0}
        self.refine = False
        self.db_output_decoder = False
        self.db_output_refiner = False
        self.triplet_loss_margin = 0.1


CONFIG = Config()
WINDOW_SIZE = 11
_VMEM_LIMIT = 32 * 1024 * 1024          # safe on v5e/v6e/v7x
_PLANE_BUDGET = 8 * 1024 * 1024         # budget for per-step live temporaries


# ---------------------------------------------------------------------------
# Constant matrices (host numpy; passed to the kernels as full-block inputs).
# ---------------------------------------------------------------------------
def gaussian_1d(window_size=WINDOW_SIZE, sigma=1.5):
    g = np.array([math.exp(-((x - window_size // 2) ** 2) / (2.0 * sigma ** 2))
                  for x in range(window_size)], dtype=np.float64)
    return (g / g.sum()).astype(np.float32)


def band_matrix(n, g):
    """(n, n) K so that (row @ K)[x] == zero-padded 'same' 1-D conv of row."""
    ws = len(g)
    pad = ws // 2
    m = np.zeros((n, n), dtype=np.float32)
    for x in range(n):
        for k in range(ws):
            j = x + k - pad
            if 0 <= j < n:
                m[j, x] = g[k]
    return m


def resize_matrix(n_in, n_out):
    """(n_out, n_in) R so that full = R @ small (align_corners=True bilinear)."""
    m = np.zeros((n_out, n_in), dtype=np.float32)
    if n_in == 1 or n_out == 1:
        m[:, 0] = 1.0
        return m
    scale = (n_in - 1) / (n_out - 1)
    for y in range(n_out):
        src = y * scale
        y0 = min(int(np.floor(src)), n_in - 1)
        y1 = min(y0 + 1, n_in - 1)
        w = src - y0
        m[y, y0] += 1.0 - w
        m[y, y1] += w
    return m


_G1D = gaussian_1d()


# ---------------------------------------------------------------------------
# Fused per-plane kernel: (optional) resize -> sigmoid/BCE -> IoU partial sums
# -> (optional) SSIM.  One lane-dense (NB, 1, 128) packed-sum block per step.
# ---------------------------------------------------------------------------
def make_plane_kernel(NB, do_resize, with_ssim):
    C1 = 0.01 ** 2
    C2 = 0.03 ** 2

    def kernel(*refs):
        it = iter(refs)
        rh = rw = kh = kw = None
        if do_resize:
            rh = next(it)[...]            # (H, Hs)  column (height) resize
            rw = next(it)[...]            # (Ws, W)  row (width) resize
        if with_ssim:
            kh = next(it)[...]            # (H, H) bf16, column Gaussian pass
            kw = next(it)[...]            # (W, W) bf16, row Gaussian pass
        pred_ref = next(it)               # (NB, Hs, Ws) logits
        gt_ref = next(it)                 # (NB, H, W)
        out_ref = next(it)                # (NB, 1, 128)

        lane = jax.lax.broadcasted_iota(jnp.int32, (1, 128), 1)

        def gconv(a):
            # separable 11x11 Gaussian; zero padding folded into kh/kw (bf16 MXU).
            t = jnp.dot(a.astype(jnp.bfloat16), kw,
                        preferred_element_type=jnp.float32)
            return jnp.dot(kh, t.astype(jnp.bfloat16),
                           preferred_element_type=jnp.float32)

        for n in range(NB):               # NB is small & static -> unrolled
            x = pred_ref[n]               # (Hs, Ws) logits
            if do_resize:
                # align_corners=True bilinear resize as two banded matmuls.
                x = jnp.dot(x, rw, preferred_element_type=jnp.float32)
                x = jnp.dot(rh, x, preferred_element_type=jnp.float32)
            g = gt_ref[n]                 # (H, W)

            # BCE-from-logits and sigmoid share one exp(-|x|) per element.
            e = jnp.exp(-jnp.abs(x))
            bce = jnp.maximum(x, 0.0) + jnp.log(1.0 + e) - x * g
            r = 1.0 / (1.0 + e)
            p = jnp.where(x >= 0.0, r, e * r)   # numerically stable sigmoid

            row = jnp.where(lane == 0, jnp.sum(bce), 0.0)
            row = row + jnp.where(lane == 1, jnp.sum(p), 0.0)
            row = row + jnp.where(lane == 2, jnp.sum(g), 0.0)
            row = row + jnp.where(lane == 3, jnp.sum(p * g), 0.0)

            if with_ssim:
                mu1 = gconv(p)
                mu2 = gconv(g)
                mu1_sq = mu1 * mu1
                mu2_sq = mu2 * mu2
                mu1_mu2 = mu1 * mu2
                sigma1_sq = gconv(p * p) - mu1_sq
                sigma2_sq = gconv(g * g) - mu2_sq
                sigma12 = gconv(p * g) - mu1_mu2
                num = (2.0 * mu1_mu2 + C1) * (2.0 * sigma12 + C2)
                den = (mu1_sq + mu2_sq + C1) * (sigma1_sq + sigma2_sq + C2)
                row = row + jnp.where(lane == 4, jnp.sum(num / den), 0.0)

            out_ref[n] = row              # one unmasked lane-dense row store

    return kernel


def _pick_nb(bc, per_plane_bytes, budget=_PLANE_BUDGET):
    # Largest NB dividing BC that fits the VMEM budget, preferring >= 2 grid
    # steps so v7x's two TensorCores both get work on the "parallel" axis.
    for prefer_parallel in (True, False):
        for nb in (8, 4, 2, 1):
            if bc % nb:
                continue
            if nb * per_plane_bytes > budget:
                continue
            if prefer_parallel and bc // nb < 2:
                continue
            return nb
    return 1


def plane_stats(pred3, gt3, with_ssim):
    """pred3: (BC, Hs, Ws) logits; gt3: (BC, H, W) f32.
    Returns (BC, 1, 128) f32: per-plane sums packed in lanes
    [0]=bce, [1]=sum(p), [2]=sum(gt), [3]=sum(p*gt), [4]=sum(ssim)."""
    BC, Hs, Ws = pred3.shape
    BC2, H, W = gt3.shape
    assert BC == BC2, "pred/gt plane count mismatch"
    do_resize = (Hs != H) or (Ws != W)

    # Rough per-plane f32 live-temporary bound (full-res work arrays).
    n_bufs = 20 if with_ssim else 6
    per_plane = H * W * 4 * n_bufs + Hs * Ws * 4 * 3
    NB = _pick_nb(BC, per_plane)
    grid = (BC // NB,)

    inputs, in_specs = [], []
    if do_resize:
        rh = jnp.asarray(resize_matrix(Hs, H))        # (H, Hs): full = RH @ small
        rw = jnp.asarray(resize_matrix(Ws, W).T)      # (Ws, W): full = small @ RW
        inputs += [rh, rw]
        in_specs += [pl.BlockSpec((H, Hs), lambda i: (0, 0)),
                     pl.BlockSpec((Ws, W), lambda i: (0, 0))]
    if with_ssim:
        # TODO(synk): the constant band/resize matrices could be single-buffered
        # (pipeline_mode=pl.Buffered(1)) to halve their VMEM footprint at large H,W.
        kh = jnp.asarray(band_matrix(H, _G1D).T).astype(jnp.bfloat16)  # column pass
        kw = jnp.asarray(band_matrix(W, _G1D)).astype(jnp.bfloat16)    # row pass
        inputs += [kh, kw]
        in_specs += [pl.BlockSpec((H, H), lambda i: (0, 0)),
                     pl.BlockSpec((W, W), lambda i: (0, 0))]
    inputs += [pred3.astype(jnp.float32), gt3]
    in_specs += [pl.BlockSpec((NB, Hs, Ws), lambda i: (i, 0, 0)),
                 pl.BlockSpec((NB, H, W), lambda i: (i, 0, 0))]

    return pl.pallas_call(
        make_plane_kernel(NB, do_resize, with_ssim),
        out_shape=jax.ShapeDtypeStruct((BC, 1, 128), jnp.float32),
        grid=grid,
        in_specs=in_specs,
        out_specs=pl.BlockSpec((NB, 1, 128), lambda i: (i, 0, 0)),
        compiler_params=pltpu.CompilerParams(
            dimension_semantics=("parallel",),
            vmem_limit_bytes=_VMEM_LIMIT),
    )(*inputs)


# ---------------------------------------------------------------------------
# SalLoss forward (Pallas-backed).
# ---------------------------------------------------------------------------
def sal_loss(scaled_preds, gt, norm_features=None, labels=None):
    gt = gt.astype(jnp.float32)
    B, C, H, W = gt.shape
    N = C * H * W
    gt3 = gt.reshape(B * C, H, W)
    n_lvl = len(scaled_preds)

    loss = jnp.float32(0.0)
    for idx, pred in enumerate(scaled_preds):
        is_last = idx == n_lvl - 1
        lambdas = (CONFIG.lambdas_sal_last if is_last
                   else CONFIG.lambdas_sal_others)
        with_ssim = bool(is_last and lambdas.get('ssim', 0.0))

        Bp, Cp, Hs, Ws = pred.shape
        pred3 = pred.astype(jnp.float32).reshape(Bp * Cp, Hs, Ws)
        st = plane_stats(pred3, gt3, with_ssim).reshape(B, C, 128)

        if lambdas.get('bce', 0.0):
            # nn.BCELoss(): mean over all B*C*H*W elements.
            loss = loss + (jnp.sum(st[..., 0]) / float(B * N)) * lambdas['bce']
        if lambdas.get('iou', 0.0):
            # IoU_loss(): sum over batch of (1 - I/U), sums taken over C,H,W.
            p_b = jnp.sum(st[..., 1], axis=1)
            g_b = jnp.sum(st[..., 2], axis=1)
            i_b = jnp.sum(st[..., 3], axis=1)
            union = p_b + g_b - i_b
            loss = loss + jnp.sum(1.0 - i_b / union) * lambdas['iou']
        if with_ssim:
            # SSIMLoss(): 1 - mean(ssim_map) over all B*C*H*W elements.
            loss = loss + (1.0 - jnp.sum(st[..., 4]) / float(B * N)) * lambdas['ssim']
        # TODO(synk): 'mse', 'reg' and 'triplet' terms have zero weight in this
        # Config and are not lowered.  With the resize fused per scale, scales at
        # different small resolutions keep one pallas_call each (cannot share a
        # block shape), which trades one extra launch for halving HBM traffic.
    return loss


if __name__ == "__main__":
    key = jax.random.PRNGKey(0)
    k_gt, k_p0, k_p1 = jax.random.split(key, 3)

    B, C, H, W = 2, 1, 16, 16
    gt = (jax.random.uniform(k_gt, (B, C, H, W)) > 0.5).astype(jnp.float32)
    # multi-scale predictions (logits): one at half resolution, one at full.
    pred0 = jax.random.normal(k_p0, (B, C, 8, 8), dtype=jnp.float32)
    pred1 = jax.random.normal(k_p1, (B, C, H, W), dtype=jnp.float32)

    loss = sal_loss([pred0, pred1], gt)
    loss = jax.block_until_ready(loss)
    assert jnp.isfinite(loss)
    print("KERNEL_OK")
</pallas_src>

<mosaic_0001>
module attributes {stable_mosaic.version = 11 : i64} {
  func.func @kernel(%arg0: i32, %arg1: memref<16x8xf32, #tpu.memory_space<vmem>>, %arg2: memref<8x16xf32, #tpu.memory_space<vmem>>, %arg3: memref<1x8x8xf32, #tpu.memory_space<vmem>>, %arg4: memref<1x16x16xf32, #tpu.memory_space<vmem>>, %arg5: memref<1x1x128xf32, #tpu.memory_space<vmem>>) attributes {dimension_semantics = [#tpu.dimension_semantics<parallel>], iteration_bounds = array<i64: 2>, scalar_prefetch = 0 : i64, scratch_operands = 0 : i64, tpu.core_type = #tpu.core_type<tc>, window_params = [{pipeline_mode = #tpu.pipeline_mode<synchronous>, transform_indices = @transform_0, window_bounds = array<i64: 16, 8>}, {pipeline_mode = #tpu.pipeline_mode<synchronous>, transform_indices = @transform_1, window_bounds = array<i64: 8, 16>}, {transform_indices = @transform_2, window_bounds = array<i64: 1, 8, 8>}, {transform_indices = @transform_3, window_bounds = array<i64: 1, 16, 16>}, {transform_indices = @transform_4, window_bounds = array<i64: 1, 1, 128>}]} {
    %c0 = arith.constant 0 : index
    %c0_0 = arith.constant 0 : index
    %0 = vector.load %arg1[%c0, %c0_0] : memref<16x8xf32, #tpu.memory_space<vmem>>, vector<16x8xf32>
    %c0_1 = arith.constant 0 : index
    %c0_2 = arith.constant 0 : index
    %1 = vector.load %arg2[%c0_1, %c0_2] : memref<8x16xf32, #tpu.memory_space<vmem>>, vector<8x16xf32>
    %2 = tpu.iota {dimensions = array<i32: 1>} : vector<1x128xi32>
    %c0_3 = arith.constant 0 : index
    %c0_4 = arith.constant 0 : index
    %c0_5 = arith.constant 0 : index
    %3 = vector.load %arg3[%c0_3, %c0_4, %c0_5] : memref<1x8x8xf32, #tpu.memory_space<vmem>>, vector<1x8x8xf32>
    %4 = vector.shape_cast %3 : vector<1x8x8xf32> to vector<8x8xf32>
    %cst = arith.constant dense<0.000000e+00> : vector<8x16xf32>
    %5 = tpu.matmul %4, %1, %cst {dimension_numbers = #tpu.dot_dimension_numbers<[1], [0], [0], [1], [0, 0, 1, 1], [], []>} : vector<8x8xf32>, vector<8x16xf32>, vector<8x16xf32> -> vector<8x16xf32>
    %cst_6 = arith.constant dense<0.000000e+00> : vector<16x16xf32>
    %6 = tpu.matmul %0, %5, %cst_6 {dimension_numbers = #tpu.dot_dimension_numbers<[1], [0], [0], [1], [0, 0, 1, 1], [], []>} : vector<16x8xf32>, vector<8x16xf32>, vector<16x16xf32> -> vector<16x16xf32>
    %c0_7 = arith.constant 0 : index
    %c0_8 = arith.constant 0 : index
    %c0_9 = arith.constant 0 : index
    %7 = vector.load %arg4[%c0_7, %c0_8, %c0_9] : memref<1x16x16xf32, #tpu.memory_space<vmem>>, vector<1x16x16xf32>
    %8 = vector.shape_cast %7 : vector<1x16x16xf32> to vector<16x16xf32>
    %9 = math.absf %6 : vector<16x16xf32>
    %cst_10 = arith.constant 0.000000e+00 : f32
    %10 = vector.broadcast %cst_10 : f32 to vector<16x16xf32>
    %11 = arith.subf %10, %9 : vector<16x16xf32>
    %12 = math.exp %11 : vector<16x16xf32>
    %cst_11 = arith.constant 0.000000e+00 : f32
    %13 = vector.broadcast %cst_11 : f32 to vector<16x16xf32>
    %14 = arith.maximumf %6, %13 : vector<16x16xf32>
    %cst_12 = arith.constant 1.000000e+00 : f32
    %15 = vector.broadcast %cst_12 : f32 to vector<16x16xf32>
    %16 = arith.addf %15, %12 : vector<16x16xf32>
    %17 = math.log %16 : vector<16x16xf32>
    %18 = arith.addf %14, %17 : vector<16x16xf32>
    %19 = arith.mulf %6, %8 : vector<16x16xf32>
    %20 = arith.subf %18, %19 : vector<16x16xf32>
    %cst_13 = arith.constant 1.000000e+00 : f32
    %21 = vector.broadcast %cst_13 : f32 to vector<16x16xf32>
    %22 = arith.addf %21, %12 : vector<16x16xf32>
    %cst_14 = arith.constant 1.000000e+00 : f32
    %23 = vector.broadcast %cst_14 : f32 to vector<16x16xf32>
    %24 = arith.divf %23, %22 : vector<16x16xf32>
    %cst_15 = arith.constant 0.000000e+00 : f32
    %25 = vector.broadcast %cst_15 : f32 to vector<16x16xf32>
    %26 = arith.cmpf oge, %6, %25 : vector<16x16xf32>
    %27 = arith.mulf %12, %24 : vector<16x16xf32>
    %28 = arith.select %26, %24, %27 : vector<16x16xi1>, vector<16x16xf32>
    %c0_i32 = arith.constant 0 : i32
    %29 = vector.broadcast %c0_i32 : i32 to vector<1x128xi32>
    %30 = arith.cmpi eq, %2, %29 : vector<1x128xi32>
    %31 = vector.shape_cast %20 : vector<16x16xf32> to vector<1x16x16xf32>
    %cst_16 = arith.constant dense<0.000000e+00> : vector<1xf32>
    %32 = vector.multi_reduction <add>, %31, %cst_16 [1, 2] : vector<1x16x16xf32> to vector<1xf32>
    %33 = vector.shape_cast %32 : vector<1xf32> to vector<1x1x1xf32>
    %34 = vector.extract %33[0, 0, 0] : f32 from vector<1x1x1xf32>
    %cst_17 = arith.constant 0.000000e+00 : f32
    %35 = vector.broadcast %34 : f32 to vector<1x128xf32>
    %36 = vector.broadcast %cst_17 : f32 to vector<1x128xf32>
    %37 = arith.select %30, %35, %36 : vector<1x128xi1>, vector<1x128xf32>
    %c1_i32 = arith.constant 1 : i32
    %38 = vector.broadcast %c1_i32 : i32 to vector<1x128xi32>
    %39 = arith.cmpi eq, %2, %38 : vector<1x128xi32>
    %40 = vector.shape_cast %28 : vector<16x16xf32> to vector<1x16x16xf32>
    %cst_18 = arith.constant dense<0.000000e+00> : vector<1xf32>
    %41 = vector.multi_reduction <add>, %40, %cst_18 [1, 2] : vector<1x16x16xf32> to vector<1xf32>
    %42 = vector.shape_cast %41 : vector<1xf32> to vector<1x1x1xf32>
    %43 = vector.extract %42[0, 0, 0] : f32 from vector<1x1x1xf32>
    %cst_19 = arith.constant 0.000000e+00 : f32
    %44 = vector.broadcast %43 : f32 to vector<1x128xf32>
    %45 = vector.broadcast %cst_19 : f32 to vector<1x128xf32>
    %46 = arith.select %39, %44, %45 : vector<1x128xi1>, vector<1x128xf32>
    %47 = arith.addf %37, %46 : vector<1x128xf32>
    %c2_i32 = arith.constant 2 : i32
    %48 = vector.broadcast %c2_i32 : i32 to vector<1x128xi32>
    %49 = arith.cmpi eq, %2, %48 : vector<1x128xi32>
    %50 = vector.shape_cast %8 : vector<16x16xf32> to vector<1x16x16xf32>
    %cst_20 = arith.constant dense<0.000000e+00> : vector<1xf32>
    %51 = vector.multi_reduction <add>, %50, %cst_20 [1, 2] : vector<1x16x16xf32> to vector<1xf32>
    %52 = vector.shape_cast %51 : vector<1xf32> to vector<1x1x1xf32>
    %53 = vector.extract %52[0, 0, 0] : f32 from vector<1x1x1xf32>
    %cst_21 = arith.constant 0.000000e+00 : f32
    %54 = vector.broadcast %53 : f32 to vector<1x128xf32>
    %55 = vector.broadcast %cst_21 : f32 to vector<1x128xf32>
    %56 = arith.select %49, %54, %55 : vector<1x128xi1>, vector<1x128xf32>
    %57 = arith.addf %47, %56 : vector<1x128xf32>
    %c3_i32 = arith.constant 3 : i32
    %58 = vector.broadcast %c3_i32 : i32 to vector<1x128xi32>
    %59 = arith.cmpi eq, %2, %58 : vector<1x128xi32>
    %60 = arith.mulf %28, %8 : vector<16x16xf32>
    %61 = vector.shape_cast %60 : vector<16x16xf32> to vector<1x16x16xf32>
    %cst_22 = arith.constant dense<0.000000e+00> : vector<1xf32>
    %62 = vector.multi_reduction <add>, %61, %cst_22 [1, 2] : vector<1x16x16xf32> to vector<1xf32>
    %63 = vector.shape_cast %62 : vector<1xf32> to vector<1x1x1xf32>
    %64 = vector.extract %63[0, 0, 0] : f32 from vector<1x1x1xf32>
    %cst_23 = arith.constant 0.000000e+00 : f32
    %65 = vector.broadcast %64 : f32 to vector<1x128xf32>
    %66 = vector.broadcast %cst_23 : f32 to vector<1x128xf32>
    %67 = arith.select %59, %65, %66 : vector<1x128xi1>, vector<1x128xf32>
    %68 = arith.addf %57, %67 : vector<1x128xf32>
    %c0_24 = arith.constant 0 : index
    %c0_25 = arith.constant 0 : index
    %c0_26 = arith.constant 0 : index
    %69 = vector.load %arg5[%c0_24, %c0_25, %c0_26] : memref<1x1x128xf32, #tpu.memory_space<vmem>>, vector<1x1x128xf32>
    %70 = vector.shape_cast %69 : vector<1x1x128xf32> to vector<1x128xf32>
    %71 = vector.shape_cast %68 : vector<1x128xf32> to vector<1x1x128xf32>
    tpu.vector_store %arg5[%c0_24, %c0_25, %c0_26], %71 {strides = array<i32>} : memref<1x1x128xf32, #tpu.memory_space<vmem>>, vector<1x1x128xf32>,
    return
  }
  func.func @transform_0(%arg0: i32) -> (i32, i32) {
    %c0_i32 = arith.constant 0 : i32
    %c0_i32_0 = arith.constant 0 : i32
    %c0_i32_1 = arith.constant 0 : i32
    return %c0_i32, %c0_i32_0 : i32, i32
  }
  func.func @transform_1(%arg0: i32) -> (i32, i32) {
    %c0_i32 = arith.constant 0 : i32
    %c0_i32_0 = arith.constant 0 : i32
    %c0_i32_1 = arith.constant 0 : i32
    return %c0_i32, %c0_i32_0 : i32, i32
  }
  func.func @transform_2(%arg0: i32) -> (i32, i32, i32) {
    %c0_i32 = arith.constant 0 : i32
    %c0_i32_0 = arith.constant 0 : i32
    %c0_i32_1 = arith.constant 0 : i32
    return %arg0, %c0_i32, %c0_i32_0 : i32, i32, i32
  }
  func.func @transform_3(%arg0: i32) -> (i32, i32, i32) {
    %c0_i32 = arith.constant 0 : i32
    %c0_i32_0 = arith.constant 0 : i32
    %c0_i32_1 = arith.constant 0 : i32
    return %arg0, %c0_i32, %c0_i32_0 : i32, i32, i32
  }
  func.func @transform_4(%arg0: i32) -> (i32, i32, i32) {
    %c0_i32 = arith.constant 0 : i32
    %c0_i32_0 = arith.constant 0 : i32
    %c0_i32_1 = arith.constant 0 : i32
    return %arg0, %c0_i32, %c0_i32_0 : i32, i32, i32
  }
}

</mosaic_0001>

<bundles_post_ra>
// kernel: tpu_custom_call.1
= control target key start
LH: loop header
LB: loop body
LE: loop exit
PB: predicated region body
PF: predicated region fallthrough
CT: control target
= control target key end

     0   :  { %9 = vsyncpa [#allocation3], 0  ;;  %s1103_s0 = inlined_call_operand.vmem [shape: f32[16,8], index: 0, kind: input, shape index: {}]   ;;  %s1104_s1 = inlined_call_operand.hbm [shape: f32[8,16], index: 1, kind: input, shape index: {}]   ;;  %s1105_s2 = inlined_call_operand.hbm [shape: f32[2,8,8], index: 2, kind: input, shape index: {}]   ;;  %s1106_s3 = inlined_call_operand.vmem [shape: f32[2,16,16], index: 3, kind: input, shape index: {}]   ;;  %s1107_s4 = inlined_call_operand.hbm [shape: f32[2,1,128], index: 4, kind: output, shape index: {}]  }
   0x1   :  { %10 = vsyncpa [#allocation6], 0 }
   0x2   :  { %12 = vsyncpa [#allocation6 + $0x1], 0 }
   0x3   :  { %13 = vsyncpa [#allocation4], 0 }
   0x4   :  { %15 = vsyncpa [#allocation4 + $0x1], 0  ;;  %s882_s15 = smov 0   ;;  %s884_s16 = smov 0  }
   0x5   :  { %s886_s17 = smov 0   ;;  %s888_s18 = smov 0  }
   0x6 LB: > { %s903_s19 = sadd.s32 4294967295, %s850_s18   ;;  %s610_s20 = sadd.s32 4294967294, %s850_s18   ;;  %s850_s18 = sphi %s888_s18, %s1131_s18   ;;  %s846_s17 = sphi %s886_s17, %s1130_s17   ;;  %s842_s16 = sphi %s884_s16, %s1129_s16   ;;  %s838_s15 = sphi %s882_s15, %s1128_s15  }
   0x7   : > { %p83_p0 = scmp.ne.s32.totalorder %s842_s16, %s838_s15  ;;  %p1108_p1 = scmp.eq.s32.totalorder %s903_s19, 0 }
   0x8   : > { %p139_p3 = scmp.eq.s32.totalorder %s610_s20, 1  ;;  %p611_p5 = scmp.ge.s32.totalorder %s850_s18, 1 }
   0x9   : > { %p912_p4 = por %p1108_p1, %p83_p0  ;;  %p146_p7 = scmp.lt.s32.totalorder %s850_s18, 3 }
   0xa   : > { %p917_p6 = por %p139_p3, %p83_p0  ;;  %s852_s24 = smov [#allocation2]  }
   0xb   : > { %s1111_s21 = scalar_select %p912_p4, 1, 0 }
   0xc   : > { %s1112_s22 = scalar_select %p917_p6, 1, 0 }
   0xd   : > { %p922_p8 = pnand %p611_p5, %p146_p7  ;;  %s162_s25 = sshll.u32 %s852_s24, 4  ;;  %s163_s25 = int_to_ptr.vmem [resolvable:$true] %s162_s25 }
   0xe   : > { %s930_s26 = sadd.s32 1, %s850_s18   ;;  %s70_s30 = sadd.s32 1, %s846_s17 }
   0xf   : > { %s1113_s23 = scalar_select %p922_p8, 1, 0 }
  0x10   : > { %p659_p10 = pneg %p922_p8  ;;  %s67_s28 = ssub.s32 %s850_s18, %s930_s26 }
  0x11   : > { %p940_p12 = scmp.eq.s32.totalorder %s67_s28, 0  ;;  %s722_s7 = scalar_lea.hbm %s1104_s1, 128 }
  0x12   : > { %p934_p11 = pnand %p659_p10, %p1108_p1  ;;  %p723_p0 = scmp.ne.s32.totalorder %s1104_s1, %s722_s7 }
  0x13   : > { %s1115_s29 = scalar_select %p940_p12, 1, 0 }
  0x14   : > { %p724_p3 = pneg %p934_p11  ;;  %p729_p10 = scmp.lt.u32.totalorder %s722_s7, %s1104_s1 }
  0x16   : > { %p725_p5 = pnand %p724_p3, %p723_p0 }
  0x18   : > { %p726_p7 = pneg %p725_p5 }
  0x1a   : > { %p731_p9 = pnand %p729_p10, %p726_p7 }
  0x1c   : > { %734 = shalt.err (!%p731_p9)
}
  0x1d   : > { %s735_s12 = scalar_lea.vmem %s163_s25, 128  ;;  %p743_p6 = scmp.lt.s32.totalorder %s163_s25, %s163_s25 }
  0x1e   : > { %p736_p1 = scmp.ne.s32.totalorder %s163_s25, %s735_s12  ;;  %p744_p4 = scmp.lt.s32.totalorder %s735_s12, %s735_s12 }
  0x20   : > { %p738_p2 = pnand %p736_p1, %p724_p3  ;;  %p745_p8 = por %p744_p4, %p743_p6 }
  0x22   : > { %p739_p13 = pneg %p738_p2 }
  0x24   : > { %p746_p12 = pnand %p745_p8, %p739_p13 }
  0x26   : > { %749 = shalt.err (!%p746_p12)
}
  0x27   : > { %662 = dma.hbm_to_vmem [thread:$0]  (!%p934_p11), %s1104_s1, 128, %s163_s25, [#allocation3]  }
  0x28   : > { %p1116_p1 = scmp.ne.s32.totalorder %s1115_s29, 0  ;;  %p78_p2 = scmp.eq.s32.totalorder %s850_s18, 0 }
  0x29   : > { %p1117_p4 = scmp.ne.s32.totalorder %s846_s17, %s842_s16  ;;  %p1118_p6 = scmp.eq.s32.totalorder %s903_s19, 1 }
  0x2a   : > { %s966_s20 = scalar_select %p1116_p1, %s846_s17, %s70_s30  }
  0x2b   : > { %p974_p8 = por %p1118_p6, %p1117_p4  ;;  %p672_p9 = scmp.lt.s32.totalorder %s850_s18, 2 }
  0x2c   : > { %s173_s27 = sand.u32 1, %s846_s17   ;;  %p1120_p12 = pmov %p1117_p4 }
  0x2d   : > { %s614_s28 = sshll.u32 %s173_s27, 3  ;;  %s615_s5 = sshll.u32 %s850_s18, 7 }
  0x2e   : > { %p79_p13 = por %p78_p2, %p1120_p12  ;;  %s987_s25 = scalar_lea.hbm %s1105_s2, %s615_s5 }
  0x2f   : > { %s177_s29 = scalar_lea.vmem [#allocation5], %s614_s28  ;;  %s174_s9 = scalar_lea.sflag [#allocation6], %s173_s27 }
  0x30   : > { %s184_s30 = sshll.u32 %s177_s29, 4  ;;  %p989_p11 = pnand %p672_p9, %p79_p13  ;;  %s993_s30 = int_to_ptr.vmem [resolvable:$true] %s184_s30 }
  0x31   : > { %s750_s10 = scalar_lea.hbm %s987_s25, 128  ;;  %s755_s13 = scalar_lea.hbm %s1105_s2, 256 }
  0x32   : > { %p751_p0 = scmp.ne.s32.totalorder %s987_s25, %s750_s10  ;;  %p752_p3 = pneg %p989_p11 }
  0x33   : > { %p756_p10 = scmp.lt.u32.totalorder %s987_s25, %s1105_s2  ;;  %p757_p1 = scmp.lt.u32.totalorder %s755_s13, %s750_s10 }
  0x34   : > { %p753_p5 = pnand %p752_p3, %p751_p0  ;;  %p759_p4 = scmp.lt.u32.totalorder %s750_s10, %s987_s25 }
  0x35   : > { %p758_p2 = por %p757_p1, %p756_p10 }
  0x36   : > { %p754_p7 = pneg %p753_p5 }
  0x37   : > { %p760_p6 = por %p759_p4, %p758_p2 }
  0x39   : > { %p761_p9 = pnand %p760_p6, %p754_p7 }
  0x3b   : > { %764 = shalt.err (!%p761_p9)
}
  0x3c   : > { %s765_s27 = scalar_lea.vmem %s993_s30, 128  ;;  %s853_s5 = smov [#allocation5]  }
  0x3d   : > { %p766_p12 = scmp.ne.s32.totalorder %s993_s30, %s765_s27  ;;  %s770_s6 = sshll.u32 %s853_s5, 4  ;;  %s771_s6 = int_to_ptr.vmem [resolvable:$false] %s770_s6 }
  0x3e   : > { %s772_s7 = scalar_lea.vmem %s771_s6, 256  ;;  %p773_p5 = scmp.lt.s32.totalorder %s993_s30, %s771_s6 }
  0x3f   : > { %p768_p13 = pnand %p766_p12, %p752_p3  ;;  %p774_p10 = scmp.lt.s32.totalorder %s772_s7, %s765_s27 }
  0x41   : > { %p769_p0 = pneg %p768_p13  ;;  %p775_p1 = por %p774_p10, %p773_p5 }
  0x43   : > { %p776_p2 = pnand %p775_p1, %p769_p0 }
  0x45   : > { %779 = shalt.err (!%p776_p2)
}
  0x46   : > { %666 = dma.hbm_to_vmem [thread:$0]  (!%p989_p11), %s987_s25, 128, %s993_s30, %s174_s9  }
  0x47   : > { %p1122_p7 = scmp.ne.s32.totalorder %s1113_s23, 0 }
  0x48   : > { %p1123_p3 = scmp.eq.s32.totalorder (!%p1122_p7), %s903_s19, 0 }
  0x49   : > { %201 = sbr.rel (%p1122_p7) target bundleno = 786 (0x312), region = 36 }
  0x50   : > { %825 = dma.done.wait (%p1123_p3), [#allocation3], 128   ;;  %p1124_p4 = pmov %p1123_p3 }
  0x51   : > { %s1027_s29 = sand.u32 1, %s842_s16   ;;  %p1125_p6 = scmp.ne.s32.totalorder %s1111_s21, 0 }
  0x52   : > { %827 = vsyncadd (%p1124_p4), [#allocation3], 4294967168  ;;  %s618_s10 = sshll.u32 %s1027_s29, 3  ;;  %s208_s8 = scalar_lea.sflag [#allocation6], %s1027_s29 }
  0x53   : > { %s211_s11 = scalar_lea.vmem [#allocation5], %s618_s10 }
  0x54   : > { %829 = dma.done.wait (%p1125_p6), %s208_s8, 128  }
  0x55   : > { %831 = vsyncadd (%p1125_p6), %s208_s8, 4294967168  ;;  %v854_v0 = vmov 0.0   ;;  %vm855_vm0 = vmmov 0   ;;  %vm251_vm1 = vcmask 64512   ;;  %v247_v1 = vld [vmem:[#allocation2] sm:$0xff]  ;;  %v250_v2 = vld [vmem:[%s211_s11] sm:$0xff] }
  0x56   : > { %633 = vmatprep.subr.mxu0 %v854_v0  ;;  %635 = vmatprep.mubr.msk.f32.mxu0 %vm855_vm0, %v854_v0  ;;  %v245_v3 = vld [vmem:[%s1103_s0] sm:$0xff]  ;;  %v246_v5 = vld [vmem:[%s1103_s0 + $0x8] sm:$0xff]  ;;  %p240_p11 = scmp.lt.s32.totalorder %s903_s19, 1  ;;  %vm441_vm2 = vcmask 130048   ;;  %s624_s10 = sshll.u32 %s903_s19, 4 }
  0x57   : > { %634 = vmatpush3.msra.mxu0 %v247_v1  ;;  %640 = vmatprep.mubr.msk.f32.mxu1 %vm251_vm1, %v245_v3  ;;  %s239_s8 = scalar_lea.vmem [#allocation7], %s1027_s29  ;;  %s1059_s30 = scalar_lea.hbm %s1107_s4, %s624_s10 }
  0x58   : > { %636 = vmatmul.mubr.msk.f32.vlgmr.msra.gmra.mrb[0].mxu0 %vm251_vm1, %v250_v2  ;;  %s241_s9 = scalar_select %p240_p11, %s903_s19, 1 }
  0x59   : > { %s520_s11 = sshll.u32 %s239_s8, 4  ;;  %s508_s21 = scalar_lea.sflag [#allocation4], %s1027_s29  ;;  %s1061_s11 = int_to_ptr.vmem [resolvable:$true] %s520_s11 }
  0x5a   : > { %s627_s12 = sshll.u32 %s241_s9, 4  ;;  %s780_s9 = scalar_lea.vmem %s1061_s11, 16 }
  0x5b   : > { %s244_s28 = scalar_lea.vmem %s1106_s3, %s627_s12  ;;  %p781_p9 = scmp.ne.s32.totalorder %s1061_s11, %s780_s9 }
  0x5c   : > { %v406_v7 = vld [vmem:[%s244_s28] sm:$0xff]  ;;  %v407_v8 = vld [vmem:[%s244_s28 + $0x8] sm:$0xff]  ;;  %s856_s19 = smov [#allocation7]  }
  0x5d   : > { %v473_v9 = vsel %vm441_vm2, %v406_v7, 0.0  ;;  %v474_v10 = vsel %vm441_vm2, %v407_v8, 0.0  ;;  %p782_p12 = pnand %p781_p9, %p974_p8  ;;  %s784_s12 = sshll.u32 %s856_s19, 4  ;;  %s785_s12 = int_to_ptr.vmem [resolvable:$false] %s784_s12 }
  0x5e   : > { %v475_v11 = vadd.f32 %v474_v10, %v473_v9  ;;  %s786_s13 = scalar_lea.vmem %s785_s12, 32  ;;  %p787_p0 = scmp.lt.s32.totalorder %s1061_s11, %s785_s12 }
  0x5f   : > { %p783_p13 = pneg %p782_p12  ;;  %p788_p5 = scmp.lt.s32.totalorder %s786_s13, %s780_s9 }
  0x60   : > { %476 = vadd.xlane.f32.xlu1 %v475_v11 }
  0x61   : > { %p789_p10 = por %p788_p5, %p787_p0 }
  0x63   : > { %p790_p1 = pnand %p789_p10, %p783_p13 }
  0xed   : > { %v477_v53 = vpop.xlane.xlu1 %476 }
  0xee   : > { %v478_v54 = vrot.slane %v477_v53, 4 }
  0xf0   : > { %v479_v57 = vadd.f32 %v478_v54, %v477_v53 }
  0xf2   : > { %v480_v62 = vrot.slane %v479_v57, 2 }
 0x12b   : > { %v321_v4 = vpop.f32.mrb[0].mxu0 }
 0x12c   : > { %v637_v6 = vpop.f32.mrb[1].mxu0  ;;  %638 = vmatprep.subr.mxu1 %v321_v4 }
 0x12d   : > { %639 = vmatpush3.msra.mxu1 %v321_v4 }
 0x12e   : > { %641 = vmatmul.mubr.msk.f32.vlgmr.msra.gmra.mrb[0].mxu1 %vm251_vm1, %v246_v5  ;;  %v481_v5 = vadd.f32 %v480_v62, %v479_v57 }
 0x130   : > { %v482_v11 = vrot.slane %v481_v5, 1 }
 0x201   : > { %v642_v12 = vpop.f32.mrb[0].mxu1 }
 0x202   : > { %v409_v13 = vand.u32 2147483647, %v642_v12  ;;  %v397_v14 = vpop.f32.mrb[1].mxu1  ;;  %v417_v28 = vmax.f32 %v642_v12, 0.0  ;;  %vm435_vm3 = vcmp.ge.f32.partialorder %v642_v12, 0.0  ;;  %v427_v44 = vmul.f32 %v642_v12, %v407_v8 }
 0x203   : > { %v408_v15 = vand.u32 2147483647, %v397_v14  ;;  %v416_v31 = vmax.f32 %v397_v14, 0.0  ;;  %vm434_vm4 = vcmp.ge.f32.partialorder %v397_v14, 0.0  ;;  %v426_v40 = vmul.f32 %v406_v7, %v397_v14 }
 0x204   : > { %v411_v16 = vsub.f32 0.0, %v409_v13 }
 0x205   : > { %v410_v17 = vsub.f32 0.0, %v408_v15  ;;  %v483_v15 = vadd.f32 %v482_v11, %v481_v5 }
 0x206   : > { %v414_v18 = vmul.f32 1.442695, %v411_v16 }
 0x207   : > { %v412_v19 = vmul.f32 1.442695, %v410_v17  ;;  %v248_v17 = vlaneseq }
 0x208   : > { %710 = vpow2.f32 %v414_v18 }
 0x209   : > { %712 = vpow2.f32 %v412_v19  ;;  %v249_v18 = vand.u32 127, %v248_v17 }
 0x20b   : > { %vm440_vm5 = vcmp.eq.s32.totalorder %v249_v18, 0  ;;  %vm456_vm6 = vcmp.eq.s32.totalorder %v249_v18, 1  ;;  %vm472_vm7 = vcmp.eq.s32.totalorder %v249_v18, 2  ;;  %vm488_vm8 = vcmp.eq.s32.totalorder %v249_v18, 3 }
 0x212   : > { %v711_v20 = vpop.eup %710 }
 0x213   : > { %v713_v21 = vpop.eup %712  ;;  %v419_v22 = vadd.f32 1.0, %v711_v20 }
 0x214   : > { %v418_v23 = vadd.f32 1.0, %v713_v21 }
 0x215   : > { %714 = vrcp.f32 %v419_v22 }
 0x216   : > { %716 = vrcp.f32 %v418_v23 }
 0x217   : > { %718 = vlog2.f32 %v418_v23 }
 0x218   : > { %720 = vlog2.f32 %v419_v22 }
 0x21f   : > { %v715_v24 = vpop.eup %714 }
 0x220   : > { %v717_v25 = vpop.eup %716  ;;  %v437_v26 = vmul.f32 %v715_v24, %v711_v20 }
 0x221   : > { %v719_v27 = vpop.eup %718  ;;  %v436_v29 = vmul.f32 %v717_v25, %v713_v21 }
 0x222   : > { %v721_v30 = vpop.eup %720  ;;  %v439_v32 = vsel %vm435_vm3, %v715_v24, %v437_v26  ;;  %v421_v33 = vmul.f32 0.6931472, %v719_v27 }
 0x223   : > { %v438_v34 = vsel %vm434_vm4, %v717_v25, %v436_v29  ;;  %v490_v35 = vmul.f32 %v439_v32, %v407_v8  ;;  %v423_v36 = vmul.f32 0.6931472, %v721_v30  ;;  %v458_v37 = vsel %vm441_vm2, %v439_v32, 0.0 }
 0x224   : > { %v489_v38 = vmul.f32 %v438_v34, %v406_v7  ;;  %v424_v39 = vadd.f32 %v421_v33, %v416_v31  ;;  %v457_v41 = vsel %vm441_vm2, %v438_v34, 0.0 }
 0x225   : > { %v492_v42 = vsel %vm441_vm2, %v490_v35, 0.0  ;;  %v425_v43 = vadd.f32 %v423_v36, %v417_v28  ;;  %v459_v45 = vadd.f32 %v458_v37, %v457_v41 }
 0x226   : > { %v491_v46 = vsel %vm441_vm2, %v489_v38, 0.0  ;;  %v428_v47 = vsub.f32 %v424_v39, %v426_v40 }
 0x227   : > { %v493_v48 = vadd.f32 %v492_v42, %v491_v46  ;;  %v429_v49 = vsub.f32 %v425_v43, %v427_v44 }
 0x228   : > { %v442_v50 = vsel %vm441_vm2, %v428_v47, 0.0 }
 0x229   : > { %494 = vadd.xlane.f32.xlu1 %v493_v48  ;;  %v443_v51 = vsel %vm441_vm2, %v429_v49, 0.0 }
 0x22a   : > { %v444_v52 = vadd.f32 %v443_v51, %v442_v50 }
 0x22c   : > { %445 = vadd.xlane.f32.xlu0 %v444_v52 }
 0x230   : > { %460 = vadd.xlane.f32.xlu0 %v459_v45 }
 0x2b6   : > { %v495_v55 = vpop.xlane.xlu1 %494 }
 0x2b7   : > { %v496_v56 = vrot.slane %v495_v55, 4 }
 0x2b9   : > { %v446_v58 = vpop.xlane.xlu0 %445  ;;  %v497_v59 = vadd.f32 %v496_v56, %v495_v55 }
 0x2ba   : > { %v447_v60 = vrot.slane %v446_v58, 4 }
 0x2bb   : > { %v498_v0 = vrot.slane %v497_v59, 2 }
 0x2bc   : > { %v448_v61 = vadd.f32 %v447_v60, %v446_v58 }
 0x2bd   : > { %v461_v63 = vpop.xlane.xlu0 %460  ;;  %v499_v6 = vadd.f32 %v498_v0, %v497_v59 }
 0x2be   : > { %v449_v1 = vrot.slane %v448_v61, 2  ;;  %v462_v2 = vrot.slane %v461_v63, 4 }
 0x2bf   : > { %v500_v13 = vrot.slane %v499_v6, 1 }
 0x2c0   : > { %v463_v3 = vadd.f32 %v462_v2, %v461_v63  ;;  %v450_v4 = vadd.f32 %v449_v1, %v448_v61 }
 0x2c1   : > { %v501_v16 = vadd.f32 %v500_v13, %v499_v6 }
 0x2c2   : > { %v464_v7 = vrot.slane %v463_v3, 2  ;;  %v451_v8 = vrot.slane %v450_v4, 1 }
 0x2c4   : > { %v465_v9 = vadd.f32 %v464_v7, %v463_v3  ;;  %v452_v10 = vadd.f32 %v451_v8, %v450_v4 }
 0x2c6   : > { %643 = vpush %v452_v10  ;;  %v466_v12 = vrot.slane %v465_v9, 1 }
 0x2c8   : > { %v467_v14 = vadd.f32 %v466_v12, %v465_v9 }
 0x2ca   : > { %645 = vpush %v467_v14 }
 0x2cb   : > { %647 = vpush %v483_v15 }
 0x2cc   : > { %649 = vpush %v501_v16 }
 0x2f7   : > { %s644_s27 = spop %643 }
 0x2f8   : > { %v454_v19 = vstv %s644_s27 }
 0x2f9   : > { %v455_v21 = vsel %vm440_vm5, %v454_v19, 0.0 }
 0x2fb   : > { %s646_s5 = spop %645 }
 0x2fc   : > { %v469_v20 = vstv %s646_s5  ;;  %s648_s6 = spop %647 }
 0x2fd   : > { %v470_v22 = vsel %vm456_vm6, %v469_v20, 0.0  ;;  %v485_v23 = vstv %s648_s6  ;;  %s650_s7 = spop %649 }
 0x2fe   : > { %v471_v24 = vadd.f32 %v470_v22, %v455_v21  ;;  %v503_v25 = vstv %s650_s7  ;;  %v486_v26 = vsel %vm472_vm7, %v485_v23, 0.0 }
 0x2ff   : > { %v504_v28 = vsel %vm488_vm8, %v503_v25, 0.0 }
 0x300   : > { %v487_v27 = vadd.f32 %v486_v26, %v471_v24 }
 0x302   : > { %v505_v29 = vadd.f32 %v504_v28, %v487_v27 }
 0x304   : > { %506 = vst [vmem:[%s239_s8] sm:$0x1] %v505_v29 }
 0x305   : > { %793 = shalt.err (!%p790_p1)
}
 0x306   : > { %s794_s29 = scalar_lea.hbm %s1059_s30, 16  ;;  %s798_s27 = scalar_lea.hbm %s1107_s4, 32 }
 0x307   : > { %p795_p2 = scmp.ne.s32.totalorder %s1059_s30, %s794_s29  ;;  %p799_p4 = scmp.lt.u32.totalorder %s1059_s30, %s1107_s4 }
 0x308   : > { %p800_p6 = scmp.lt.u32.totalorder %s798_s27, %s794_s29  ;;  %p802_p9 = scmp.lt.u32.totalorder %s794_s29, %s1059_s30 }
 0x309   : > { %p796_p7 = pnand %p795_p2, %p974_p8 }
 0x30a   : > { %p801_p11 = por %p800_p6, %p799_p4 }
 0x30b   : > { %p797_p3 = pneg %p796_p7 }
 0x30c   : > { %p803_p12 = por %p802_p9, %p801_p11 }
 0x30e   : > { %p804_p13 = pnand %p803_p12, %p797_p3 }
 0x310   : > { %807 = shalt.err (!%p804_p13)
}
 0x311   : > { %657 = dma.vmem_to_hbm [thread:$0]  (%p974_p8), %s1061_s11, 16, %s1059_s30, %s508_s21  }
 0x312 PF: > { %s532_s7 = sand.u32 1, %s838_s15   ;;  %p1126_p0 = scmp.ne.s32.totalorder %s1112_s22, 0 }
 0x313   : > { %p1127_p5 = scmp.ge.s32.totalorder %s850_s18, 2  ;;  %s533_s10 = scalar_lea.sflag [#allocation4], %s532_s7 }
 0x315   : > { %p668_p10 = pnand %p1127_p5, %p1126_p0 }
 0x317   : > { %833 = dma.done.wait (!%p668_p10), %s533_s10, 16  }
 0x318   : > { %835 = vsyncadd (!%p668_p10), %s533_s10, 4294967280  ;;  %p18_p1 = scmp.ge.s32.totalorder %s930_s26, 4   ;;  %s1128_s15 = smov %s842_s16 }
 0x319   : > { %s1129_s16 = smov %s846_s17  ;;  %s1130_s17 = smov %s966_s20 }
 0x31a   : > { %s1131_s18 = smov %s930_s26  ;;  %20 = sbr.rel (!%p18_p1) target bundleno = 6 (0x6), region = 89 }
 0x321   :  { %537 = vsyncpa [#allocation3], 1 }
 0x322   :  { %539 = vsyncpa [#allocation3 + $0x1], 1 }
 0x323   :  { %540 = vsyncpa [#allocation6], 1 }
 0x324   :  { %542 = vsyncpa [#allocation6 + $0x1], 1 }
 0x325   :  { %543 = vsyncpa [#allocation4], 1 }
 0x326   :  { %545 = vsyncpa [#allocation4 + $0x1], 1 }

</bundles_post_ra>
